<compile_context>
chip_gen: v6e
topology: v6e:2x2x1
jax: 0.10.0
libtpu: 0.0.40
codegen_flags: <defaults>
</compile_context>

<pallas_src>
import jax
import jax.numpy as jnp
from jax.experimental import pallas as pl
from jax.experimental.pallas import tpu as pltpu

D_IN, D_H1, D_H2, D_OUT = 7, 30, 20, 2


def _round_up(x, m):
    return (x + m - 1) // m * m


def _make_kernel(n_chunks, cb):
    """Builds the fused MLP kernel for a (tb, 7) batch block."""

    def kernel(x_ref, w1_ref, b1_ref, w2_ref, b2_ref, w3_ref, b3_ref, o_ref):
        # Tiny resident weights/biases: read once per grid step (hoisted out
        # of the chunk loop).
        w1 = w1_ref[...]       # (30, 7)
        b1 = b1_ref[...]       # (30, 1)  broadcasts along lanes
        w2 = w2_ref[...]       # (20, 30)
        b2 = b2_ref[...]       # (20, 1)
        w3 = w3_ref[...]       # ( 2, 20)
        b3 = b3_ref[...]       # ( 2, 1)

        # Statically unrolled loop over batch sub-chunks: keeps the hidden
        # activations at (30|20, cb) instead of (30|20, tb), so the big DMA
        # tile does not blow up the compute working set.  All slice offsets
        # are static.
        for j in range(n_chunks):
            r0 = j * cb
            xc = x_ref[pl.ds(r0, cb), :]                     # (cb, 7), natural layout
            # Feature-major layer 1: h1^T = W1 @ xc^T  (contract both minor
            # dims, the same q@k^T-style contraction used in attention
            # kernels -> handled by the MXU).
            h1 = jax.lax.dot_general(
                w1, xc,
                dimension_numbers=(((1,), (1,)), ((), ())),
                preferred_element_type=jnp.float32)          # (30, cb)
            h1 = jnp.maximum(h1 + b1, 0.0)
            h2 = jnp.dot(w2, h1,
                         preferred_element_type=jnp.float32)  # (20, cb)
            h2 = jnp.maximum(h2 + b2, 0.0)
            y = jnp.dot(w3, h2,
                        preferred_element_type=jnp.float32) + b3   # (2, cb)
            # Lane-dense, full-width store into the (2, tb) output block.
            o_ref[:, pl.ds(r0, cb)] = y.astype(o_ref.dtype)

    return kernel


def electron_forward(x, params, *, block_rows=32768, chunk=2048):
    """x: (B, 7) float32 -> (B, 2) float32."""
    w1, b1 = params["w1"], params["b1"]   # (30, 7), (30, 1)
    w2, b2 = params["w2"], params["b2"]   # (20, 30), (20, 1)
    w3, b3 = params["w3"], params["b3"]   # ( 2, 20), ( 2, 1)

    B = x.shape[0]

    # Inner compute chunk (lanes of the output block): multiple of 128.
    cb = _round_up(max(int(chunk), 128), 128)
    # Batch tile (sublanes of the x block / lanes of the out block): a
    # multiple of cb, clamped for small batches.
    tb = min(int(block_rows), _round_up(B, cb))
    tb = max(cb, (tb // cb) * cb)
    n_chunks = tb // cb
    grid = (pl.cdiv(B, tb),)

    # Rough per-kernel VMEM footprint: the (tb, 7) x block pads its minor
    # dim to 128 lanes in VMEM and is double-buffered, plus the (2, tb)
    # output blocks, the per-chunk temporaries and the resident weights.
    est = (2 * tb * 128 * 4                      # x block double buffer
           + 2 * 8 * tb * 4                      # out block double buffer
           + 2 * (cb * 128 * 4 + (32 + 24 + 8 + 8) * cb * 4)   # chunk temps
           + 12 * 32 * 128 * 4)                  # weights / biases
    # <= ~48 MB keeps v7x (64 MB physical) safe; v5e/v6e have 128 MB.
    vmem_limit = int(max(32 << 20, min(48 << 20, est + (8 << 20))))

    weight_bytes = 4 * (D_IN * D_H1 + D_H1 + D_H1 * D_H2 + D_H2
                        + D_H2 * D_OUT + D_OUT)
    cost = pl.CostEstimate(
        flops=2 * B * (D_IN * D_H1 + D_H1 * D_H2 + D_H2 * D_OUT),
        transcendentals=0,
        bytes_accessed=4 * B * (D_IN + D_OUT) + weight_bytes,
    )

    out_t = pl.pallas_call(
        _make_kernel(n_chunks, cb),
        out_shape=jax.ShapeDtypeStruct((D_OUT, B), jnp.float32),
        grid=grid,
        in_specs=[
            pl.BlockSpec((tb, D_IN), lambda i: (i, 0)),     # x, natural (B,7) layout
            pl.BlockSpec((D_H1, D_IN), lambda i: (0, 0)),   # W1 (resident)
            pl.BlockSpec((D_H1, 1), lambda i: (0, 0)),      # b1
            pl.BlockSpec((D_H2, D_H1), lambda i: (0, 0)),   # W2
            pl.BlockSpec((D_H2, 1), lambda i: (0, 0)),      # b2
            pl.BlockSpec((D_OUT, D_H2), lambda i: (0, 0)),  # W3
            pl.BlockSpec((D_OUT, 1), lambda i: (0, 0)),     # b3
        ],
        out_specs=pl.BlockSpec((D_OUT, tb), lambda i: (0, i)),
        compiler_params=pltpu.CompilerParams(
            dimension_semantics=("parallel",),
            vmem_limit_bytes=vmem_limit,
        ),
        cost_estimate=cost,
    )(x, w1, b1, w2, b2, w3, b3)

    # Only the small (2, B) output is transposed in the wrapper; the input
    # was consumed untouched (no transpose / pad HBM passes).
    return out_t.T


def init_params(key):
    """Deterministic init matching the PyTorch layer shapes.

    PyTorch Linear(in, out) has weight (out, in) and bias (out,).  We keep
    the (out, in) weight layout (the kernel computes W @ x^T) and store the
    bias as (out, 1) so it broadcasts along the lane (batch) axis.
    """
    ks = jax.random.split(key, 6)

    def uniform(k, shape, fan_in):
        bound = 1.0 / jnp.sqrt(fan_in)
        return jax.random.uniform(k, shape, jnp.float32, -bound, bound)

    return {
        "w1": uniform(ks[0], (D_H1, D_IN), float(D_IN)),
        "b1": uniform(ks[1], (D_H1, 1), float(D_IN)),
        "w2": uniform(ks[2], (D_H2, D_H1), float(D_H1)),
        "b2": uniform(ks[3], (D_H2, 1), float(D_H1)),
        "w3": uniform(ks[4], (D_OUT, D_H2), float(D_H2)),
        "b3": uniform(ks[5], (D_OUT, 1), float(D_H2)),
    }


def electron_reference(x, params):
    """Pure-JAX reference (f32, highest precision) for correctness check."""
    hp = jax.lax.Precision.HIGHEST
    h1 = jnp.maximum(
        jnp.dot(x, params["w1"].T, precision=hp) + params["b1"].T, 0.0)
    h2 = jnp.maximum(
        jnp.dot(h1, params["w2"].T, precision=hp) + params["b2"].T, 0.0)
    return jnp.dot(h2, params["w3"].T, precision=hp) + params["b3"].T


if __name__ == "__main__":
    key = jax.random.PRNGKey(0)
    k_param, k_x1, k_x2 = jax.random.split(key, 3)
    params = init_params(k_param)

    # Case 1: multi-step grid with a ragged (partial) last batch block and
    # two inner compute chunks per block.
    B1 = 1000
    x1 = jax.random.normal(k_x1, (B1, D_IN), dtype=jnp.float32)
    out1 = jax.block_until_ready(
        electron_forward(x1, params, block_rows=512, chunk=256))
    ref1 = electron_reference(x1, params)
    assert out1.shape == (B1, D_OUT), out1.shape
    assert jnp.allclose(out1, ref1, atol=1e-4, rtol=1e-4), (
        "Pallas output mismatch vs reference (B=1000)")

    # Case 2: single full block (batch == tile), two inner chunks.
    B2 = 256
    x2 = jax.random.normal(k_x2, (B2, D_IN), dtype=jnp.float32)
    out2 = jax.block_until_ready(
        electron_forward(x2, params, block_rows=256, chunk=128))
    ref2 = electron_reference(x2, params)
    assert out2.shape == (B2, D_OUT), out2.shape
    assert jnp.allclose(out2, ref2, atol=1e-4, rtol=1e-4), (
        "Pallas output mismatch vs reference (B=256)")

    print("KERNEL_OK")
</pallas_src>

<mosaic_0001>
module attributes {stable_mosaic.version = 11 : i64} {
  func.func @kernel(%arg0: i32, %arg1: memref<512x7xf32, #tpu.memory_space<vmem>>, %arg2: memref<30x7xf32, #tpu.memory_space<vmem>>, %arg3: memref<30x1xf32, #tpu.memory_space<vmem>>, %arg4: memref<20x30xf32, #tpu.memory_space<vmem>>, %arg5: memref<20x1xf32, #tpu.memory_space<vmem>>, %arg6: memref<2x20xf32, #tpu.memory_space<vmem>>, %arg7: memref<2x1xf32, #tpu.memory_space<vmem>>, %arg8: memref<2x512xf32, #tpu.memory_space<vmem>>) attributes {dimension_semantics = [#tpu.dimension_semantics<parallel>], iteration_bounds = array<i64: 2>, scalar_prefetch = 0 : i64, scratch_operands = 0 : i64, tpu.core_type = #tpu.core_type<tc>, window_params = [{transform_indices = @transform_0, window_bounds = array<i64: 512, 7>}, {pipeline_mode = #tpu.pipeline_mode<synchronous>, transform_indices = @transform_1, window_bounds = array<i64: 30, 7>}, {pipeline_mode = #tpu.pipeline_mode<synchronous>, transform_indices = @transform_2, window_bounds = array<i64: 30, 1>}, {pipeline_mode = #tpu.pipeline_mode<synchronous>, transform_indices = @transform_3, window_bounds = array<i64: 20, 30>}, {pipeline_mode = #tpu.pipeline_mode<synchronous>, transform_indices = @transform_4, window_bounds = array<i64: 20, 1>}, {pipeline_mode = #tpu.pipeline_mode<synchronous>, transform_indices = @transform_5, window_bounds = array<i64: 2, 20>}, {pipeline_mode = #tpu.pipeline_mode<synchronous>, transform_indices = @transform_6, window_bounds = array<i64: 2, 1>}, {transform_indices = @transform_7, window_bounds = array<i64: 2, 512>}]} {
    %c0 = arith.constant 0 : index
    %c0_0 = arith.constant 0 : index
    %0 = vector.load %arg2[%c0, %c0_0] : memref<30x7xf32, #tpu.memory_space<vmem>>, vector<30x7xf32>
    %c0_1 = arith.constant 0 : index
    %c0_2 = arith.constant 0 : index
    %1 = vector.load %arg3[%c0_1, %c0_2] : memref<30x1xf32, #tpu.memory_space<vmem>>, vector<30x1xf32>
    %c0_3 = arith.constant 0 : index
    %c0_4 = arith.constant 0 : index
    %2 = vector.load %arg4[%c0_3, %c0_4] : memref<20x30xf32, #tpu.memory_space<vmem>>, vector<20x30xf32>
    %c0_5 = arith.constant 0 : index
    %c0_6 = arith.constant 0 : index
    %3 = vector.load %arg5[%c0_5, %c0_6] : memref<20x1xf32, #tpu.memory_space<vmem>>, vector<20x1xf32>
    %c0_7 = arith.constant 0 : index
    %c0_8 = arith.constant 0 : index
    %4 = vector.load %arg6[%c0_7, %c0_8] : memref<2x20xf32, #tpu.memory_space<vmem>>, vector<2x20xf32>
    %c0_9 = arith.constant 0 : index
    %c0_10 = arith.constant 0 : index
    %5 = vector.load %arg7[%c0_9, %c0_10] : memref<2x1xf32, #tpu.memory_space<vmem>>, vector<2x1xf32>
    %c0_11 = arith.constant 0 : index
    %c0_12 = arith.constant 0 : index
    %6 = vector.load %arg1[%c0_11, %c0_12] : memref<512x7xf32, #tpu.memory_space<vmem>>, vector<256x7xf32>
    %cst = arith.constant dense<0.000000e+00> : vector<30x256xf32>
    %7 = tpu.matmul %0, %6, %cst {dimension_numbers = #tpu.dot_dimension_numbers<[1], [1], [0], [0], [0, 0, 1, 0], [], []>} : vector<30x7xf32>, vector<256x7xf32>, vector<30x256xf32> -> vector<30x256xf32>
    %8 = vector.broadcast %1 : vector<30x1xf32> to vector<30x256xf32>
    %9 = arith.addf %7, %8 : vector<30x256xf32>
    %cst_13 = arith.constant 0.000000e+00 : f32
    %10 = vector.broadcast %cst_13 : f32 to vector<30x256xf32>
    %11 = arith.maximumf %9, %10 : vector<30x256xf32>
    %cst_14 = arith.constant dense<0.000000e+00> : vector<20x256xf32>
    %12 = tpu.matmul %2, %11, %cst_14 {dimension_numbers = #tpu.dot_dimension_numbers<[1], [0], [0], [1], [0, 0, 1, 1], [], []>} : vector<20x30xf32>, vector<30x256xf32>, vector<20x256xf32> -> vector<20x256xf32>
    %13 = vector.broadcast %3 : vector<20x1xf32> to vector<20x256xf32>
    %14 = arith.addf %12, %13 : vector<20x256xf32>
    %cst_15 = arith.constant 0.000000e+00 : f32
    %15 = vector.broadcast %cst_15 : f32 to vector<20x256xf32>
    %16 = arith.maximumf %14, %15 : vector<20x256xf32>
    %cst_16 = arith.constant dense<0.000000e+00> : vector<2x256xf32>
    %17 = tpu.matmul %4, %16, %cst_16 {dimension_numbers = #tpu.dot_dimension_numbers<[1], [0], [0], [1], [0, 0, 1, 1], [], []>} : vector<2x20xf32>, vector<20x256xf32>, vector<2x256xf32> -> vector<2x256xf32>
    %18 = vector.broadcast %5 : vector<2x1xf32> to vector<2x256xf32>
    %19 = arith.addf %17, %18 : vector<2x256xf32>
    %c0_17 = arith.constant 0 : index
    %c0_18 = arith.constant 0 : index
    %20 = vector.load %arg8[%c0_17, %c0_18] : memref<2x512xf32, #tpu.memory_space<vmem>>, vector<2x256xf32>
    tpu.vector_store %arg8[%c0_17, %c0_18], %19 {strides = array<i32>} : memref<2x512xf32, #tpu.memory_space<vmem>>, vector<2x256xf32>,
    %c256 = arith.constant 256 : index
    %c0_19 = arith.constant 0 : index
    %21 = vector.load %arg1[%c256, %c0_19] : memref<512x7xf32, #tpu.memory_space<vmem>>, vector<256x7xf32>
    %cst_20 = arith.constant dense<0.000000e+00> : vector<30x256xf32>
    %22 = tpu.matmul %0, %21, %cst_20 {dimension_numbers = #tpu.dot_dimension_numbers<[1], [1], [0], [0], [0, 0, 1, 0], [], []>} : vector<30x7xf32>, vector<256x7xf32>, vector<30x256xf32> -> vector<30x256xf32>
    %23 = vector.broadcast %1 : vector<30x1xf32> to vector<30x256xf32>
    %24 = arith.addf %22, %23 : vector<30x256xf32>
    %cst_21 = arith.constant 0.000000e+00 : f32
    %25 = vector.broadcast %cst_21 : f32 to vector<30x256xf32>
    %26 = arith.maximumf %24, %25 : vector<30x256xf32>
    %cst_22 = arith.constant dense<0.000000e+00> : vector<20x256xf32>
    %27 = tpu.matmul %2, %26, %cst_22 {dimension_numbers = #tpu.dot_dimension_numbers<[1], [0], [0], [1], [0, 0, 1, 1], [], []>} : vector<20x30xf32>, vector<30x256xf32>, vector<20x256xf32> -> vector<20x256xf32>
    %28 = vector.broadcast %3 : vector<20x1xf32> to vector<20x256xf32>
    %29 = arith.addf %27, %28 : vector<20x256xf32>
    %cst_23 = arith.constant 0.000000e+00 : f32
    %30 = vector.broadcast %cst_23 : f32 to vector<20x256xf32>
    %31 = arith.maximumf %29, %30 : vector<20x256xf32>
    %cst_24 = arith.constant dense<0.000000e+00> : vector<2x256xf32>
    %32 = tpu.matmul %4, %31, %cst_24 {dimension_numbers = #tpu.dot_dimension_numbers<[1], [0], [0], [1], [0, 0, 1, 1], [], []>} : vector<2x20xf32>, vector<20x256xf32>, vector<2x256xf32> -> vector<2x256xf32>
    %33 = vector.broadcast %5 : vector<2x1xf32> to vector<2x256xf32>
    %34 = arith.addf %32, %33 : vector<2x256xf32>
    %c0_25 = arith.constant 0 : index
    %c256_26 = arith.constant 256 : index
    %35 = vector.load %arg8[%c0_25, %c256_26] : memref<2x512xf32, #tpu.memory_space<vmem>>, vector<2x256xf32>
    tpu.vector_store %arg8[%c0_25, %c256_26], %34 {strides = array<i32>} : memref<2x512xf32, #tpu.memory_space<vmem>>, vector<2x256xf32>,
    return
  }
  func.func @transform_0(%arg0: i32) -> (i32, i32) {
    %c0_i32 = arith.constant 0 : i32
    %c0_i32_0 = arith.constant 0 : i32
    return %arg0, %c0_i32 : i32, i32
  }
  func.func @transform_1(%arg0: i32) -> (i32, i32) {
    %c0_i32 = arith.constant 0 : i32
    %c0_i32_0 = arith.constant 0 : i32
    %c0_i32_1 = arith.constant 0 : i32
    return %c0_i32, %c0_i32_0 : i32, i32
  }
  func.func @transform_2(%arg0: i32) -> (i32, i32) {
    %c0_i32 = arith.constant 0 : i32
    %c0_i32_0 = arith.constant 0 : i32
    %c0_i32_1 = arith.constant 0 : i32
    return %c0_i32, %c0_i32_0 : i32, i32
  }
  func.func @transform_3(%arg0: i32) -> (i32, i32) {
    %c0_i32 = arith.constant 0 : i32
    %c0_i32_0 = arith.constant 0 : i32
    %c0_i32_1 = arith.constant 0 : i32
    return %c0_i32, %c0_i32_0 : i32, i32
  }
  func.func @transform_4(%arg0: i32) -> (i32, i32) {
    %c0_i32 = arith.constant 0 : i32
    %c0_i32_0 = arith.constant 0 : i32
    %c0_i32_1 = arith.constant 0 : i32
    return %c0_i32, %c0_i32_0 : i32, i32
  }
  func.func @transform_5(%arg0: i32) -> (i32, i32) {
    %c0_i32 = arith.constant 0 : i32
    %c0_i32_0 = arith.constant 0 : i32
    %c0_i32_1 = arith.constant 0 : i32
    return %c0_i32, %c0_i32_0 : i32, i32
  }
  func.func @transform_6(%arg0: i32) -> (i32, i32) {
    %c0_i32 = arith.constant 0 : i32
    %c0_i32_0 = arith.constant 0 : i32
    %c0_i32_1 = arith.constant 0 : i32
    return %c0_i32, %c0_i32_0 : i32, i32
  }
  func.func @transform_7(%arg0: i32) -> (i32, i32) {
    %c0_i32 = arith.constant 0 : i32
    %c0_i32_0 = arith.constant 0 : i32
    return %c0_i32, %arg0 : i32, i32
  }
}

</mosaic_0001>

<bundles_post_ra>
// kernel: tpu_custom_call.1
= control target key start
LH: loop header
LB: loop body
LE: loop exit
PB: predicated region body
PF: predicated region fallthrough
CT: control target
= control target key end

     0   :  { %12 = vsyncpa [#allocation3], 0  ;;  %s2009_s0 = inlined_call_operand.vmem [shape: f32[1000,7], index: 0, kind: input, shape index: {}]   ;;  %s2010_s1 = inlined_call_operand.vmem [shape: f32[30,7], index: 1, kind: input, shape index: {}]   ;;  %s2011_s2 = inlined_call_operand.vmem [shape: f32[30,1], index: 2, kind: input, shape index: {}]   ;;  %s2012_s3 = inlined_call_operand.vmem [shape: f32[20,30], index: 3, kind: input, shape index: {}]   ;;  %s2013_s4 = inlined_call_operand.vmem [shape: f32[20,1], index: 4, kind: input, shape index: {}]   ;;  %s2014_s5 = inlined_call_operand.vmem [shape: f32[2,20], index: 5, kind: input, shape index: {}]   ;;  %s2015_s6 = inlined_call_operand.vmem [shape: f32[2,1], index: 6, kind: input, shape index: {}]   ;;  %s2016_s7 = inlined_call_operand.hbm [shape: f32[2,1000], index: 7, kind: output, shape index: {}]  }
   0x1   :  { %14 = vsyncpa [#allocation3 + $0x1], 0  ;;  %s1608_s24 = smov 0   ;;  %s1610_s25 = smov 0  }
   0x2   :  { %s1612_s26 = smov 0   ;;  %s1614_s27 = smov 0  }
   0x3 LB: > { %s1629_s28 = sadd.s32 4294967295, %s1563_s27   ;;  %s1277_s29 = sadd.s32 4294967294, %s1563_s27   ;;  %s1563_s27 = sphi %s1614_s27, %s2022_s27   ;;  %s1559_s26 = sphi %s1612_s26, %s2021_s26   ;;  %s1555_s25 = sphi %s1610_s25, %s2020_s25   ;;  %s1551_s24 = sphi %s1608_s24, %s2019_s24  }
   0x4   : > { %s1633_s30 = sadd.s32 1, %s1563_s27   ;;  %s179_s8 = sadd.s32 1, %s1559_s26 }
   0x5   : > { %s176_s9 = ssub.s32 %s1563_s27, %s1633_s30  ;;  %p189_p0 = scmp.ne.s32.totalorder %s1559_s26, %s1555_s25 }
   0x6   : > { %p177_p1 = scmp.eq.s32.totalorder %s176_s9, 0  ;;  %p190_p2 = scmp.eq.s32.totalorder %s1629_s28, 1 }
   0x7   : > { %p195_p3 = scmp.ne.s32.totalorder %s1555_s25, %s1551_s24  ;;  %p196_p4 = scmp.eq.s32.totalorder %s1277_s29, 1 }
   0x8   : > { %s1644_s10 = scalar_select %p177_p1, %s1559_s26, %s179_s8  }
   0x9   : > { %p1646_p5 = por %p190_p2, %p189_p0  ;;  %p1650_p6 = por %p196_p4, %p195_p3 }
   0xa   : > { %p1280_p7 = scmp.ge.s32.totalorder %s1563_s27, 1  ;;  %p249_p8 = scmp.lt.s32.totalorder %s1563_s27, 3 }
   0xc   : > { %p250_p9 = pnand %p1280_p7, %p249_p8 }
   0xd   : > { %s1282_s13 = sshll.u32 (!%p250_p9), %s1629_s28, 6  ;;  %s1379_s8 = sshll.u32 (!%p250_p9), %s1629_s28, 7 }
   0xe   : > { %253 = sbr.rel (%p250_p9) target bundleno = 1228 (0x4cc), region = 48  ;;  %p290_p10 = scmp.lt.s32.totalorder (!%p250_p9), %s1282_s13, 124 }
   0xf   : > { %s1567_s28 = smov (!%p250_p9), [#allocation2]  }
  0x10   : > { %s1507_s19 = sshll.u32 (!%p250_p9), %s1567_s28, 4  ;;  %s1508_s19 = int_to_ptr.vmem [resolvable:$false] %s1507_s19 }
  0x11   : > { %s1509_s20 = scalar_lea.vmem (!%p250_p9), %s1508_s19, 256 }
  0x13   : > { %vm368_vm0 = vcmask 56320   ;;  %v1660_v0 = vld [vmem:[%s2010_s1] sm:$0xff]  ;;  %v1565_v1 = vmov 0   ;;  %v305_v2 = vld [vmem:[%s2011_s2 + $0x8] sm:$0xff]  ;;  %v307_v3 = vld [vmem:[%s2011_s2 + $0x18] sm:$0x3f] }
  0x14   : > { %1412 = vmatprep.mubr.msk.f32.mxu0 %vm368_vm0, %v1660_v0  ;;  %1502 = vset.pattern.permute.xlu1 %v1565_v1  ;;  %s2024_s13 = smov (!%p290_p10, %s1282_s13), 124  ;;  %v304_v4 = vld [vmem:[%s2011_s2] sm:$0xff]  ;;  %v306_v5 = vld [vmem:[%s2011_s2 + $0x10] sm:$0xff]  ;;  %v312_v6 = vld [vmem:[%s2013_s4 + $0x8] sm:$0xff]  ;;  %v1566_v45 = vmov 0.0   ;;  %vm599_vm1 = vcmask 1045504  }
  0x15   : > { %355 = vperm.xlu1 %1502, %v305_v2   ;;  %1501 = vset.pattern.permute.xlu0 %v1565_v1  ;;  %s1283_s29 = sshll.u32 %s2024_s13, 3  ;;  %v313_v10 = vld [vmem:[%s2013_s4 + $0x10] sm:$0xf]  ;;  %v315_v13 = vld [vmem:[%s2015_s6] sm:$0x3]  ;;  %v1760_v42 = vld [vmem:[%s2010_s1 + $0x8] sm:$0xff]  ;;  %s1216_s13 = scalar_lea.hbm %s2016_s7, %s1379_s8 }
  0x16   : > { %365 = vperm.xlu0 %1501, %v307_v3   ;;  %s1679_s14 = scalar_lea.vmem %s2009_s0, %s1283_s29  ;;  %v311_v14 = vld [vmem:[%s2013_s4] sm:$0xff]  ;;  %v1769_v43 = vld [vmem:[%s2010_s1 + $0x10] sm:$0xff]  ;;  %v1778_v44 = vld [vmem:[%s2010_s1 + $0x18] sm:$0x3f]  ;;  %670 = vmatprep.mubr.f32.mxu1 %v1566_v45  ;;  %vm589_vm2 = vcmask 244736   ;;  %vm704_vm3 = vcmask 1043456  }
  0x17   : > { %v347_v7 = vld [vmem:[%s1679_s14 + $0xf8] sm:$0xff]  ;;  %v346_v9 = vld [vmem:[%s1679_s14 + $0xf0] sm:$0xff]  ;;  %v345_v12 = vld [vmem:[%s1679_s14 + $0xe8] sm:$0xff]  ;;  %vm700_vm4 = vcmask 162816  }
  0x18   : > { %v331_v8 = vld [vmem:[%s1679_s14 + $0x78] sm:$0xff]  ;;  %1380 = vmatprep.subr.msk.mxu0 %vm368_vm0, %v347_v7  ;;  %v330_v11 = vld [vmem:[%s1679_s14 + $0x70] sm:$0xff]  ;;  %v329_v15 = vld [vmem:[%s1679_s14 + $0x68] sm:$0xff] }
  0x19   : > { %350 = vperm.xlu1 %1502, %v304_v4   ;;  %1381 = vmatpush3.xpose.msk.msra.mxu0 %vm368_vm0, %v331_v8  ;;  %v344_v16 = vld [vmem:[%s1679_s14 + $0xe0] sm:$0xff]  ;;  %v343_v18 = vld [vmem:[%s1679_s14 + $0xd8] sm:$0xff]  ;;  %v342_v20 = vld [vmem:[%s1679_s14 + $0xd0] sm:$0xff] }
  0x1a   : > { %360 = vperm.xlu0 %1501, %v306_v5   ;;  %1382 = vmatprep.subr.msk.mxu0 %vm368_vm0, %v346_v9  ;;  %v328_v17 = vld [vmem:[%s1679_s14 + $0x60] sm:$0xff]  ;;  %v327_v19 = vld [vmem:[%s1679_s14 + $0x58] sm:$0xff]  ;;  %v326_v21 = vld [vmem:[%s1679_s14 + $0x50] sm:$0xff] }
  0x1b   : > { %v341_v22 = vld [vmem:[%s1679_s14 + $0xc8] sm:$0xff]  ;;  %v340_v24 = vld [vmem:[%s1679_s14 + $0xc0] sm:$0xff]  ;;  %v339_v26 = vld [vmem:[%s1679_s14 + $0xb8] sm:$0xff] }
  0x1c   : > { %v325_v23 = vld [vmem:[%s1679_s14 + $0x48] sm:$0xff]  ;;  %v324_v25 = vld [vmem:[%s1679_s14 + $0x40] sm:$0xff]  ;;  %v323_v27 = vld [vmem:[%s1679_s14 + $0x38] sm:$0xff] }
  0x1d   : > { %581 = vperm.xlu1 %1502, %v312_v6   ;;  %1383 = vmatpush3.xpose.msk.msra.mxu0 %vm368_vm0, %v330_v11  ;;  %v338_v28 = vld [vmem:[%s1679_s14 + $0xb0] sm:$0xff]  ;;  %v337_v30 = vld [vmem:[%s1679_s14 + $0xa8] sm:$0xff]  ;;  %v336_v32 = vld [vmem:[%s1679_s14 + $0xa0] sm:$0xff] }
  0x1e   : > { %586 = vperm.xlu0 %1501, %v313_v10   ;;  %1384 = vmatprep.subr.msk.mxu0 %vm368_vm0, %v345_v12  ;;  %v322_v29 = vld [vmem:[%s1679_s14 + $0x30] sm:$0xff]  ;;  %v321_v31 = vld [vmem:[%s1679_s14 + $0x28] sm:$0xff]  ;;  %v320_v33 = vld [vmem:[%s1679_s14 + $0x20] sm:$0xff] }
  0x1f   : > { %v335_v34 = vld [vmem:[%s1679_s14 + $0x98] sm:$0xff]  ;;  %v334_v36 = vld [vmem:[%s1679_s14 + $0x90] sm:$0xff]  ;;  %v333_v38 = vld [vmem:[%s1679_s14 + $0x88] sm:$0xff] }
  0x20   : > { %v319_v35 = vld [vmem:[%s1679_s14 + $0x18] sm:$0xff]  ;;  %v318_v37 = vld [vmem:[%s1679_s14 + $0x10] sm:$0xff]  ;;  %v317_v39 = vld [vmem:[%s1679_s14 + $0x8] sm:$0xff] }
  0x21   : > { %697 = vperm.xlu1 %1502, %v315_v13   ;;  %1385 = vmatpush3.xpose.msk.msra.mxu0 %vm368_vm0, %v329_v15  ;;  %v332_v40 = vld [vmem:[%s1679_s14 + $0x80] sm:$0xff]  ;;  %v1817_v12 = vld [vmem:[%s2012_s3 + $0x8] sm:$0xff]  ;;  %v1825_v13 = vld [vmem:[%s2012_s3 + $0x10] sm:$0xf] }
  0x22   : > { %576 = vperm.xlu0 %1501, %v311_v14   ;;  %1386 = vmatprep.subr.msk.mxu0 %vm368_vm0, %v344_v16  ;;  %v316_v41 = vld [vmem:[%s1679_s14] sm:$0xff] }
  0x23   : > { %v1809_v11 = vld [vmem:[%s2012_s3] sm:$0xff] }
  0x25   : > { %1387 = vmatpush3.xpose.msk.msra.mxu0 %vm368_vm0, %v328_v17 }
  0x26   : > { %1388 = vmatprep.subr.msk.mxu0 %vm368_vm0, %v343_v18 }
  0x29   : > { %1389 = vmatpush3.xpose.msk.msra.mxu0 %vm368_vm0, %v327_v19 }
  0x2a   : > { %1390 = vmatprep.subr.msk.mxu0 %vm368_vm0, %v342_v20 }
  0x2d   : > { %1391 = vmatpush3.xpose.msk.msra.mxu0 %vm368_vm0, %v326_v21 }
  0x2e   : > { %1392 = vmatprep.subr.msk.mxu0 %vm368_vm0, %v341_v22 }
  0x31   : > { %1393 = vmatpush3.xpose.msk.msra.mxu0 %vm368_vm0, %v325_v23 }
  0x32   : > { %1394 = vmatprep.subr.msk.mxu0 %vm368_vm0, %v340_v24 }
  0x35   : > { %1395 = vmatpush3.xpose.msk.msra.mxu0 %vm368_vm0, %v324_v25 }
  0x36   : > { %1396 = vmatprep.subr.msk.mxu0 %vm368_vm0, %v339_v26 }
  0x39   : > { %1397 = vmatpush3.xpose.msk.msra.mxu0 %vm368_vm0, %v323_v27 }
  0x3a   : > { %1398 = vmatprep.subr.msk.mxu0 %vm368_vm0, %v338_v28 }
  0x3d   : > { %1399 = vmatpush3.xpose.msk.msra.mxu0 %vm368_vm0, %v322_v29 }
  0x3e   : > { %1400 = vmatprep.subr.msk.mxu0 %vm368_vm0, %v337_v30 }
  0x41   : > { %1401 = vmatpush3.xpose.msk.msra.mxu0 %vm368_vm0, %v321_v31 }
  0x42   : > { %1402 = vmatprep.subr.msk.mxu0 %vm368_vm0, %v336_v32 }
  0x45   : > { %1403 = vmatpush3.xpose.msk.msra.mxu0 %vm368_vm0, %v320_v33 }
  0x46   : > { %1404 = vmatprep.subr.msk.mxu0 %vm368_vm0, %v335_v34 }
  0x49   : > { %1405 = vmatpush3.xpose.msk.msra.mxu0 %vm368_vm0, %v319_v35  ;;  %v1847_v35 = vld [vmem:[%s2014_s5] sm:$0x3] }
  0x4a   : > { %1406 = vmatprep.subr.msk.mxu0 %vm368_vm0, %v334_v36  ;;  %v825_v36 = vld [vmem:[%s1679_s14 + $0x1f8] sm:$0xff] }
  0x4d   : > { %1407 = vmatpush3.xpose.msk.msra.mxu0 %vm368_vm0, %v318_v37  ;;  %v809_v37 = vld [vmem:[%s1679_s14 + $0x178] sm:$0xff] }
  0x4e   : > { %1408 = vmatprep.subr.msk.mxu0 %vm368_vm0, %v333_v38  ;;  %v824_v38 = vld [vmem:[%s1679_s14 + $0x1f0] sm:$0xff] }
  0x51   : > { %1409 = vmatpush3.xpose.msk.msra.mxu0 %vm368_vm0, %v317_v39  ;;  %v808_v39 = vld [vmem:[%s1679_s14 + $0x170] sm:$0xff] }
  0x52   : > { %1410 = vmatprep.subr.msk.mxu0 %vm368_vm0, %v332_v40  ;;  %v823_v40 = vld [vmem:[%s1679_s14 + $0x1e8] sm:$0xff] }
  0x55   : > { %1411 = vmatpush3.xpose.msk.msra.mxu0 %vm368_vm0, %v316_v41  ;;  %v807_v41 = vld [vmem:[%s1679_s14 + $0x168] sm:$0xff] }
  0x58   : > { %1413 = vmatmul.mubr.msk.f32.vlgmr.msra.gmra.mxu0 %vm368_vm0, %v1660_v0 }
  0x59   : > { %1414 = vmatprep.mubr.msk.f32.mxu0 %vm368_vm0, %v1760_v42 }
  0x5c   : > { %1415 = vmatmul.mubr.msk.f32.gmra.mxu0 %vm368_vm0, %v1760_v42 }
  0x5d   : > { %1416 = vmatprep.mubr.msk.f32.mxu0 %vm368_vm0, %v1769_v43 }
  0x60   : > { %1417 = vmatmul.mubr.msk.f32.gmra.mxu0 %vm368_vm0, %v1769_v43 }
  0x61   : > { %1418 = vmatprep.mubr.msk.f32.mxu0 %vm368_vm0, %v1778_v44 }
  0x64   : > { %1419 = vmatmul.mubr.msk.f32.gmra.mxu0 %vm368_vm0, %v1778_v44 }
  0x65   : > { %1089 = vmatprep.mubr.f32.mxu0 %v1566_v45 }
  0x90   : > { %v1790_v53 = vpop.permute.xlu1 %355 }
  0x91   : > { %v1788_v50 = vpop.permute.xlu0 %365 }
  0x94   : > { %v1798_v61 = vpop.permute.xlu1 %350 }
  0x95   : > { %v1792_v55 = vpop.permute.xlu0 %360 }
  0x98   : > { %v1832_v20 = vpop.permute.xlu1 %581 }
  0x99   : > { %v1830_v17 = vpop.permute.xlu0 %586 }
  0x9d   : > { %v1837_v25 = vpop.permute.xlu0 %576 }
 0x118   : > { %v543_v46 = vpop.f32.mrf.mxu0 }
 0x119   : > { %v544_v5 = vadd.f32 %v543_v46, %v1798_v61  ;;  %v822_v46 = vld [vmem:[%s1679_s14 + $0x1e0] sm:$0xff] }
 0x11a   : > { %v545_v47 = vpop.f32.mrf.mxu0 }
 0x11b   : > { %v546_v3 = vadd.f32 %v545_v47, %v1798_v61  ;;  %v566_v10 = vmax.f32 %v544_v5, 0.0  ;;  %v806_v47 = vld [vmem:[%s1679_s14 + $0x160] sm:$0xff]  ;;  %v813_v5 = vld [vmem:[%s1679_s14 + $0x198] sm:$0xff] }
 0x11c   : > { %v549_v48 = vpop.f32.mrf.mxu0 }
 0x11d   : > { %v550_v1 = vadd.f32 %v549_v48, %v1790_v53  ;;  %v567_v9 = vmax.f32 %v546_v3, 0.0  ;;  %v821_v48 = vld [vmem:[%s1679_s14 + $0x1d8] sm:$0xff]  ;;  %v814_v3 = vld [vmem:[%s1679_s14 + $0x1a0] sm:$0xff] }
 0x11e   : > { %v551_v49 = vpop.f32.mrf.mxu0 }
 0x11f   : > { %v552_v62 = vadd.f32 %v551_v49, %v1790_v53  ;;  %v568_v8 = vmax.f32 %v550_v1, 0.0  ;;  %v805_v49 = vld [vmem:[%s1679_s14 + $0x158] sm:$0xff]  ;;  %v815_v1 = vld [vmem:[%s1679_s14 + $0x1a8] sm:$0xff] }
 0x120   : > { %v555_v51 = vpop.f32.mrf.mxu0 }
 0x121   : > { %v556_v60 = vadd.f32 %v555_v51, %v1792_v55  ;;  %v569_v7 = vmax.f32 %v552_v62, 0.0  ;;  %v820_v51 = vld [vmem:[%s1679_s14 + $0x1d0] sm:$0xff] }
 0x122   : > { %v557_v52 = vpop.f32.mrf.mxu0  ;;  %v816_v62 = vld [vmem:[%s1679_s14 + $0x1b0] sm:$0xff] }
 0x123   : > { %v558_v58 = vadd.f32 %v557_v52, %v1792_v55  ;;  %v570_v6 = vmax.f32 %v556_v60, 0.0  ;;  %v804_v52 = vld [vmem:[%s1679_s14 + $0x150] sm:$0xff]  ;;  %v801_v60 = vld [vmem:[%s1679_s14 + $0x138] sm:$0xff] }
 0x124   : > { %v561_v54 = vpop.f32.mrf.mxu0 }
 0x125   : > { %v562_v56 = vadd.f32 %v561_v54, %v1788_v50  ;;  %v571_v4 = vmax.f32 %v558_v58, 0.0  ;;  %v819_v54 = vld [vmem:[%s1679_s14 + $0x1c8] sm:$0xff]  ;;  %v802_v58 = vld [vmem:[%s1679_s14 + $0x140] sm:$0xff] }
 0x126   : > { %v563_v57 = vpop.f32.mrf.mxu0 }
 0x127   : > { %v564_v59 = vadd.f32 %v563_v57, %v1788_v50  ;;  %v572_v2 = vmax.f32 %v562_v56, 0.0  ;;  %v803_v56 = vld [vmem:[%s1679_s14 + $0x148] sm:$0xff]  ;;  %v818_v57 = vld [vmem:[%s1679_s14 + $0x1c0] sm:$0xff] }
 0x129   : > { %v573_v63 = vmax.f32 %v564_v59, 0.0  ;;  %v817_v59 = vld [vmem:[%s1679_s14 + $0x1b8] sm:$0xff] }
 0x12b   : > { %1320 = vmatprep.subr.msk.mxu1 %vm599_vm1, %v573_v63  ;;  %v800_v63 = vld [vmem:[%s1679_s14 + $0x130] sm:$0xff] }
 0x12c   : > { %1321 = vmatpush1.msk.msra.mxu1 %vm599_vm1, %v572_v2  ;;  %v799_v2 = vld [vmem:[%s1679_s14 + $0x128] sm:$0xff] }
 0x12d   : > { %632 = vmatprep.subr.mxu1 %v571_v4  ;;  %v798_v4 = vld [vmem:[%s1679_s14 + $0x120] sm:$0xff] }
 0x12e   : > { %633 = vmatpush1.msra.mxu1 %v570_v6  ;;  %v797_v6 = vld [vmem:[%s1679_s14 + $0x118] sm:$0xff] }
 0x12f   : > { %634 = vmatprep.subr.mxu1 %v569_v7  ;;  %v812_v7 = vld [vmem:[%s1679_s14 + $0x190] sm:$0xff] }
 0x130   : > { %635 = vmatpush1.msra.mxu1 %v568_v8  ;;  %v796_v8 = vld [vmem:[%s1679_s14 + $0x110] sm:$0xff] }
 0x131   : > { %636 = vmatprep.subr.mxu1 %v567_v9  ;;  %v811_v9 = vld [vmem:[%s1679_s14 + $0x188] sm:$0xff] }
 0x132   : > { %637 = vmatpush1.msra.mxu1 %v566_v10  ;;  %v795_v10 = vld [vmem:[%s1679_s14 + $0x108] sm:$0xff] }
 0x133   : > { %1322 = vmatmul.mubr.msk.f32.vlgmr.msra.gmra.mxu1 %vm589_vm2, %v1809_v11 }
 0x134   : > { %676 = vmatprep.mubr.f32.mxu1 %v1566_v45 }
 0x137   : > { %1323 = vmatmul.mubr.msk.f32.gmra.mxu1 %vm589_vm2, %v1817_v12 }
 0x138   : > { %682 = vmatprep.mubr.f32.mxu1 %v1566_v45 }
 0x13b   : > { %1324 = vmatmul.mubr.msk.f32.gmra.mxu1 %vm589_vm2, %v1825_v13 }
 0x13c   : > { %775 = vmatprep.mubr.f32.mxu1 %v1566_v45 }
 0x1f3   : > { %v672_v14 = vpop.f32.mrf.mxu1 }
 0x1f4   : > { %v673_v29 = vadd.f32 %v672_v14, %v1837_v25  ;;  %v810_v14 = vld [vmem:[%s1679_s14 + $0x180] sm:$0xff] }
 0x1f5   : > { %v674_v15 = vpop.f32.mrf.mxu1 }
 0x1f6   : > { %v675_v27 = vadd.f32 %v674_v15, %v1837_v25  ;;  %v689_v34 = vmax.f32 %v673_v29, 0.0  ;;  %v794_v15 = vld [vmem:[%s1679_s14 + $0x100] sm:$0xff]  ;;  %s282_s14 = sand.u32 1, %s1555_s25  }
 0x1f7   : > { %v678_v16 = vpop.f32.mrf.mxu1  ;;  %s1281_s23 = sshll.u32 %s282_s14, 3  ;;  %s1204_s17 = scalar_lea.sflag [#allocation3], %s282_s14 }
 0x1f8   : > { %v679_v26 = vadd.f32 %v678_v16, %v1832_v20  ;;  %v690_v33 = vmax.f32 %v675_v27, 0.0  ;;  %v1934_v16 = vpop.permute.xlu1 %697  ;;  %s1938_s29 = scalar_lea.vmem [#allocation2], %s1281_s23 }
 0x1f9   : > { %v680_v18 = vpop.f32.mrf.mxu1  ;;  %s1218_s9 = sshll.u32 %s1938_s29, 4  ;;  %s1219_s9 = int_to_ptr.vmem [resolvable:$true] %s1218_s9 }
 0x1fa   : > { %v681_v23 = vadd.f32 %v680_v18, %v1832_v20  ;;  %v691_v32 = vmax.f32 %v679_v26, 0.0  ;;  %s1503_s18 = scalar_lea.vmem %s1219_s9, 128  ;;  %p1510_p0 = scmp.lt.s32.totalorder %s1219_s9, %s1508_s19 }
 0x1fb   : > { %v684_v19 = vpop.f32.mrf.mxu1  ;;  %p1504_p11 = scmp.ne.s32.totalorder %s1219_s9, %s1503_s18  ;;  %p1511_p1 = scmp.lt.s32.totalorder %s1509_s20, %s1503_s18 }
 0x1fc   : > { %v685_v21 = vadd.f32 %v684_v19, %v1830_v17  ;;  %v692_v31 = vmax.f32 %v681_v23, 0.0 }
 0x1fd   : > { %v686_v22 = vpop.f32.mrf.mxu1  ;;  %p1505_p12 = pnand %p1504_p11, %p1646_p5  ;;  %p1512_p2 = por %p1511_p1, %p1510_p0 }
 0x1fe   : > { %v687_v24 = vadd.f32 %v686_v22, %v1830_v17  ;;  %v693_v30 = vmax.f32 %v685_v21, 0.0 }
 0x1ff   : > { %p1506_p13 = pneg %p1505_p12 }
 0x200   : > { %v694_v28 = vmax.f32 %v687_v24, 0.0 }
 0x201   : > { %p1513_p3 = pnand %p1512_p2, %p1506_p13 }
 0x202   : > { %1325 = vmatprep.subr.msk.mxu1 %vm704_vm3, %v694_v28 }
 0x203   : > { %1326 = vmatpush1.msk.msra.mxu1 %vm704_vm3, %v693_v30 }
 0x204   : > { %739 = vmatprep.subr.mxu1 %v692_v31 }
 0x205   : > { %740 = vmatpush1.msra.mxu1 %v691_v32 }
 0x206   : > { %741 = vmatprep.subr.mxu1 %v690_v33 }
 0x207   : > { %742 = vmatpush1.msra.mxu1 %v689_v34 }
 0x208   : > { %1327 = vmatmul.mubr.msk.f32.vlgmr.msra.gmra.mxu1 %vm700_vm4, %v1847_v35  ;;  %1420 = vmatprep.subr.msk.mxu1 %vm368_vm0, %v825_v36 }
 0x209   : > { %1421 = vmatpush3.xpose.msk.msra.mxu1 %vm368_vm0, %v809_v37  ;;  %1452 = vmatprep.mubr.msk.f32.mxu1 %vm368_vm0, %v1660_v0 }
 0x20a   : > { %1422 = vmatprep.subr.msk.mxu1 %vm368_vm0, %v824_v38 }
 0x20d   : > { %1423 = vmatpush3.xpose.msk.msra.mxu1 %vm368_vm0, %v808_v39 }
 0x20e   : > { %1424 = vmatprep.subr.msk.mxu1 %vm368_vm0, %v823_v40 }
 0x211   : > { %1425 = vmatpush3.xpose.msk.msra.mxu1 %vm368_vm0, %v807_v41 }
 0x212   : > { %1426 = vmatprep.subr.msk.mxu1 %vm368_vm0, %v822_v46 }
 0x215   : > { %1427 = vmatpush3.xpose.msk.msra.mxu1 %vm368_vm0, %v806_v47 }
 0x216   : > { %1428 = vmatprep.subr.msk.mxu1 %vm368_vm0, %v821_v48 }
 0x219   : > { %1429 = vmatpush3.xpose.msk.msra.mxu1 %vm368_vm0, %v805_v49 }
 0x21a   : > { %1430 = vmatprep.subr.msk.mxu1 %vm368_vm0, %v820_v51 }
 0x21d   : > { %1431 = vmatpush3.xpose.msk.msra.mxu1 %vm368_vm0, %v804_v52 }
 0x21e   : > { %1432 = vmatprep.subr.msk.mxu1 %vm368_vm0, %v819_v54 }
 0x221   : > { %1433 = vmatpush3.xpose.msk.msra.mxu1 %vm368_vm0, %v803_v56 }
 0x222   : > { %1434 = vmatprep.subr.msk.mxu1 %vm368_vm0, %v818_v57 }
 0x225   : > { %1435 = vmatpush3.xpose.msk.msra.mxu1 %vm368_vm0, %v802_v58 }
 0x226   : > { %1436 = vmatprep.subr.msk.mxu1 %vm368_vm0, %v817_v59 }
 0x229   : > { %1437 = vmatpush3.xpose.msk.msra.mxu1 %vm368_vm0, %v801_v60 }
 0x22a   : > { %1438 = vmatprep.subr.msk.mxu1 %vm368_vm0, %v816_v62 }
 0x22d   : > { %1439 = vmatpush3.xpose.msk.msra.mxu1 %vm368_vm0, %v800_v63 }
 0x22e   : > { %1440 = vmatprep.subr.msk.mxu1 %vm368_vm0, %v815_v1 }
 0x231   : > { %1441 = vmatpush3.xpose.msk.msra.mxu1 %vm368_vm0, %v799_v2 }
 0x232   : > { %1442 = vmatprep.subr.msk.mxu1 %vm368_vm0, %v814_v3 }
 0x235   : > { %1443 = vmatpush3.xpose.msk.msra.mxu1 %vm368_vm0, %v798_v4 }
 0x236   : > { %1444 = vmatprep.subr.msk.mxu1 %vm368_vm0, %v813_v5 }
 0x239   : > { %1445 = vmatpush3.xpose.msk.msra.mxu1 %vm368_vm0, %v797_v6 }
 0x23a   : > { %1446 = vmatprep.subr.msk.mxu1 %vm368_vm0, %v812_v7 }
 0x23d   : > { %1447 = vmatpush3.xpose.msk.msra.mxu1 %vm368_vm0, %v796_v8 }
 0x23e   : > { %1448 = vmatprep.subr.msk.mxu1 %vm368_vm0, %v811_v9 }
 0x241   : > { %1449 = vmatpush3.xpose.msk.msra.mxu1 %vm368_vm0, %v795_v10 }
 0x242   : > { %1450 = vmatprep.subr.msk.mxu1 %vm368_vm0, %v810_v14 }
 0x245   : > { %1451 = vmatpush3.xpose.msk.msra.mxu1 %vm368_vm0, %v794_v15 }
 0x248   : > { %1453 = vmatmul.mubr.msk.f32.vlgmr.msra.gmra.mxu1 %vm368_vm0, %v1660_v0 }
 0x249   : > { %1454 = vmatprep.mubr.msk.f32.mxu1 %vm368_vm0, %v1760_v42 }
 0x24c   : > { %1455 = vmatmul.mubr.msk.f32.gmra.mxu1 %vm368_vm0, %v1760_v42 }
 0x24d   : > { %1456 = vmatprep.mubr.msk.f32.mxu1 %vm368_vm0, %v1769_v43 }
 0x250   : > { %1457 = vmatmul.mubr.msk.f32.gmra.mxu1 %vm368_vm0, %v1769_v43 }
 0x251   : > { %1458 = vmatprep.mubr.msk.f32.mxu1 %vm368_vm0, %v1778_v44 }
 0x254   : > { %1459 = vmatmul.mubr.msk.f32.gmra.mxu1 %vm368_vm0, %v1778_v44 }
 0x2c8   : > { %v777_v0 = vpop.f32.mrf.mxu1 }
 0x2c9   : > { %v778_v42 = vadd.f32 %v777_v0, %v1934_v16 }
 0x2ca   : > { %v779_v18 = vpop.f32.mrf.mxu1 }
 0x2cb   : > { %v780_v19 = vadd.f32 %v779_v18, %v1934_v16 }
 0x2cd   : > { %v784_v21 = vcombine.low %v778_v42, %v780_v19 }
 0x2cf   : > { %1328 = vst.sshfl [vmem:[%s1938_s29] sm:$0x33 pattern:$0x76325410] %v784_v21 }
 0x308   : > { %v988_v43 = vpop.f32.mrf.mxu1 }
 0x309   : > { %v989_v40 = vadd.f32 %v988_v43, %v1798_v61 }
 0x30a   : > { %v990_v22 = vpop.f32.mrf.mxu1 }
 0x30b   : > { %v991_v38 = vadd.f32 %v990_v22, %v1798_v61  ;;  %v1011_v47 = vmax.f32 %v989_v40, 0.0 }
 0x30c   : > { %v994_v23 = vpop.f32.mrf.mxu1 }
 0x30d   : > { %v995_v36 = vadd.f32 %v994_v23, %v1790_v53 }
 0x30e   : > { %v996_v44 = vpop.f32.mrf.mxu1 }
 0x30f   : > { %v997_v33 = vadd.f32 %v996_v44, %v1790_v53 }
 0x310   : > { %v1000_v24 = vpop.f32.mrf.mxu1 }
 0x311   : > { %v1001_v32 = vadd.f32 %v1000_v24, %v1792_v55  ;;  %v1014_v46 = vmax.f32 %v997_v33, 0.0 }
 0x312   : > { %v1002_v26 = vpop.f32.mrf.mxu1 }
 0x313   : > { %v1003_v30 = vadd.f32 %v1002_v26, %v1792_v55  ;;  %v1015_v41 = vmax.f32 %v1001_v32, 0.0  ;;  %v1012_v55 = vmax.f32 %v991_v38, 0.0 }
 0x314   : > { %v1006_v27 = vpop.f32.mrf.mxu1 }
 0x315   : > { %v1007_v28 = vadd.f32 %v1006_v27, %v1788_v50  ;;  %v1016_v39 = vmax.f32 %v1003_v30, 0.0 }
 0x316   : > { %v1008_v29 = vpop.f32.mrf.mxu1 }
 0x317   : > { %v1009_v31 = vadd.f32 %v1008_v29, %v1788_v50  ;;  %v1017_v37 = vmax.f32 %v1007_v28, 0.0  ;;  %v1013_v50 = vmax.f32 %v995_v36, 0.0 }
 0x319   : > { %v1018_v34 = vmax.f32 %v1009_v31, 0.0 }
 0x31b   : > { %1365 = vmatprep.subr.msk.mxu0 %vm599_vm1, %v1018_v34 }
 0x31c   : > { %1366 = vmatpush1.msk.msra.mxu0 %vm599_vm1, %v1017_v37 }
 0x31d   : > { %1051 = vmatprep.subr.mxu0 %v1016_v39 }
 0x31e   : > { %1052 = vmatpush1.msra.mxu0 %v1015_v41 }
 0x31f   : > { %1053 = vmatprep.subr.mxu0 %v1014_v46 }
 0x320   : > { %1054 = vmatpush1.msra.mxu0 %v1013_v50 }
 0x321   : > { %1055 = vmatprep.subr.mxu0 %v1012_v55 }
 0x322   : > { %1056 = vmatpush1.msra.mxu0 %v1011_v47 }
 0x323   : > { %1367 = vmatmul.mubr.msk.f32.vlgmr.msra.gmra.mxu0 %vm589_vm2, %v1809_v11 }
 0x324   : > { %1095 = vmatprep.mubr.f32.mxu0 %v1566_v45 }
 0x327   : > { %1368 = vmatmul.mubr.msk.f32.gmra.mxu0 %vm589_vm2, %v1817_v12 }
 0x328   : > { %1101 = vmatprep.mubr.f32.mxu0 %v1566_v45 }
 0x32b   : > { %1369 = vmatmul.mubr.msk.f32.gmra.mxu0 %vm589_vm2, %v1825_v13 }
 0x32c   : > { %1184 = vmatprep.mubr.f32.mxu0 %v1566_v45 }
 0x3e3   : > { %v1091_v53 = vpop.f32.mrf.mxu0 }
 0x3e4   : > { %v1092_v45 = vadd.f32 %v1091_v53, %v1837_v25 }
 0x3e5   : > { %v1093_v61 = vpop.f32.mrf.mxu0 }
 0x3e6   : > { %v1094_v57 = vadd.f32 %v1093_v61, %v1837_v25 }
 0x3e7   : > { %v1097_v48 = vpop.f32.mrf.mxu0 }
 0x3e8   : > { %v1098_v12 = vadd.f32 %v1097_v48, %v1832_v20  ;;  %v1109_v62 = vmax.f32 %v1094_v57, 0.0 }
 0x3e9   : > { %v1099_v49 = vpop.f32.mrf.mxu0 }
 0x3ea   : > { %v1100_v54 = vadd.f32 %v1099_v49, %v1832_v20  ;;  %v1110_v60 = vmax.f32 %v1098_v12, 0.0 }
 0x3eb   : > { %v1103_v51 = vpop.f32.mrf.mxu0 }
 0x3ec   : > { %v1104_v52 = vadd.f32 %v1103_v51, %v1830_v17  ;;  %v1111_v59 = vmax.f32 %v1100_v54, 0.0 }
 0x3ed   : > { %v1105_v11 = vpop.f32.mrf.mxu0 }
 0x3ee   : > { %v1106_v56 = vadd.f32 %v1105_v11, %v1830_v17  ;;  %v1112_v13 = vmax.f32 %v1104_v52, 0.0  ;;  %v1108_v17 = vmax.f32 %v1092_v45, 0.0 }
 0x3f0   : > { %v1113_v58 = vmax.f32 %v1106_v56, 0.0 }
 0x3f2   : > { %1370 = vmatprep.subr.msk.mxu0 %vm704_vm3, %v1113_v58 }
 0x3f3   : > { %1371 = vmatpush1.msk.msra.mxu0 %vm704_vm3, %v1112_v13 }
 0x3f4   : > { %1148 = vmatprep.subr.mxu0 %v1111_v59 }
 0x3f5   : > { %1149 = vmatpush1.msra.mxu0 %v1110_v60 }
 0x3f6   : > { %1150 = vmatprep.subr.mxu0 %v1109_v62 }
 0x3f7   : > { %1151 = vmatpush1.msra.mxu0 %v1108_v17 }
 0x3f8   : > { %1372 = vmatmul.mubr.msk.f32.vlgmr.msra.gmra.mxu0 %vm700_vm4, %v1847_v35 }
 0x4b8   : > { %v1186_v20 = vpop.f32.mrf.mxu0 }
 0x4b9   : > { %v1187_v63 = vadd.f32 %v1186_v20, %v1934_v16 }
 0x4ba   : > { %v1188_v25 = vpop.f32.mrf.mxu0 }
 0x4bb   : > { %v1189_v1 = vadd.f32 %v1188_v25, %v1934_v16 }
 0x4bd   : > { %v1193_v2 = vcombine.low %v1187_v63, %v1189_v1 }
 0x4bf   : > { %1373 = vst.sshfl [vmem:[%s1938_s29 + $0x4] sm:$0x33 pattern:$0x76325410] %v1193_v2 }
 0x4c0   : > { %1516 = shalt.err (!%p1513_p3)
}
 0x4c1   : > { %s1517_s21 = scalar_lea.hbm %s1216_s13, 128  ;;  %s1521_s23 = scalar_lea.hbm %s2016_s7, 256 }
 0x4c2   : > { %p1518_p4 = scmp.ne.s32.totalorder %s1216_s13, %s1517_s21  ;;  %p1522_p9 = scmp.lt.s32.totalorder %s1216_s13, %s2016_s7 }
 0x4c3   : > { %p1523_p10 = scmp.lt.s32.totalorder %s1521_s23, %s1517_s21 }
 0x4c4   : > { %p1519_p7 = pnand %p1518_p4, %p1646_p5 }
 0x4c5   : > { %p1524_p11 = por %p1523_p10, %p1522_p9 }
 0x4c6   : > { %p1520_p8 = pneg %p1519_p7 }
 0x4c8   : > { %p1525_p12 = pnand %p1524_p11, %p1520_p8 }
 0x4ca   : > { %1528 = shalt.err (!%p1525_p12)
}
 0x4cb   : > { %1460 = dma.vmem_to_hbm [thread:$0]  (%p1646_p5), %s1219_s9, 128, %s1216_s13, %s1204_s17  }
 0x4cc PF: > { %p1466_p13 = scmp.ge.s32.totalorder %s1563_s27, 2  ;;  %s1230_s15 = sand.u32 1, %s1551_s24  }
 0x4cd   : > { %s1231_s16 = scalar_lea.sflag [#allocation3], %s1230_s15 }
 0x4ce   : > { %p1463_p0 = pnand %p1466_p13, %p1650_p6 }
 0x4d0   : > { %p1464_p1 = pneg %p1463_p0 }
 0x4d2   : > { %1546 = dma.done.wait (%p1464_p1), %s1231_s16, 128  }
 0x4d3   : > { %1548 = vsyncadd (%p1464_p1), %s1231_s16, 4294967168  ;;  %p17_p2 = scmp.ge.s32.totalorder %s1633_s30, 4   ;;  %s2019_s24 = smov %s1555_s25 }
 0x4d4   : > { %s2020_s25 = smov %s1559_s26  ;;  %s2021_s26 = smov %s1644_s10 }
 0x4d5   : > { %s2022_s27 = smov %s1633_s30  ;;  %19 = sbr.rel (!%p17_p2) target bundleno = 3 (0x3), region = 83 }
 0x4da   :  { %1236 = vsyncpa [#allocation3], 1 }
 0x4db   :  { %1238 = vsyncpa [#allocation3 + $0x1], 1 }

</bundles_post_ra>
